<compile_context>
chip_gen: v6e
topology: v6e:2x2x1
jax: 0.10.0
libtpu: 0.0.40
codegen_flags: <defaults>
</compile_context>

<pallas_src>
import jax
import jax.numpy as jnp
from jax.experimental import pallas as pl
from jax.experimental.pallas import tpu as pltpu


_LANE = 128
_SUBLANE = 8


def _round_up(x, m):
    return ((x + m - 1) // m) * m


# ----------------------------------------------------------------------------
# Generation-aware VMEM / tile limits
# ----------------------------------------------------------------------------
def _vmem_capacity_bytes():
    try:
        return int(pltpu.get_tpu_info().vmem_capacity_bytes)
    except Exception:
        return 64 * 1024 * 1024          # conservative (v7x-sized) fallback


_VMEM_CAP = _vmem_capacity_bytes()
if _VMEM_CAP >= 100 * 1024 * 1024:       # v5e / v6e: 128 MiB VMEM
    _VMEM_LIMIT = 96 * 1024 * 1024
    _MAX_ROW_TILE = 512
    _MAX_COL_TILE = 1024
    _K_TILE_CANDIDATES = (1024, 512, 256)
else:                                     # v7x: 64 MiB / TensorCore
    _VMEM_LIMIT = int(_VMEM_CAP * 0.6)
    _MAX_ROW_TILE = 512
    _MAX_COL_TILE = 512
    _K_TILE_CANDIDATES = (512, 256)
_FUSED_VMEM_BUDGET = int(_VMEM_LIMIT * 0.7)


def _row_granule(compute_dtype):
    # bf16 tiles pack two rows per sublane -> keep row tiles 16-aligned.
    return 16 if jnp.dtype(compute_dtype).itemsize <= 2 else _SUBLANE


def _pick_row_tiling(m, *, granule, max_tile, min_programs=1):
    """Return (row_tile, padded_rows).

    Picks the largest tile <= max_tile (multiple of `granule`) whose zero-pad
    waste stays <= 12.5% of the rows, preferring tilings with at least
    `min_programs` grid steps (keeps both TensorCores busy on dual-TC parts).
    """
    m_g = _round_up(max(int(m), 1), granule)
    cand = max(granule, (min(max_tile, m_g) // granule) * granule)
    while cand > granule:
        m_pad = _round_up(m_g, cand)
        waste = m_pad - m_g
        if waste * 8 <= m_g and m_pad // cand >= min_programs:
            return cand, m_pad
        cand -= granule
    return granule, m_g


def _pick_col_tile(n_pad):
    """Largest multiple of 128 that divides n_pad, capped per generation."""
    best = _LANE
    t = _LANE
    while t <= min(_MAX_COL_TILE, n_pad):
        if n_pad % t == 0:
            best = t
        t += _LANE
    return best


def _pick_k_tile(k_pad):
    if k_pad <= 1024:
        return k_pad                      # single K step, no split needed
    for cand in _K_TILE_CANDIDATES + (384, 128):
        if k_pad % cand == 0:
            return cand
    return k_pad                          # only reachable for exotic hand-built weights


# ----------------------------------------------------------------------------
# Kernel 1a: dense linear, single K step:  o = x @ Wt + b   (no accumulator)
# ----------------------------------------------------------------------------
def _linear_kernel_single_k(x_ref, wt_ref, b_ref, o_ref):
    o_ref[...] = (jnp.dot(x_ref[...], wt_ref[...],
                          preferred_element_type=jnp.float32)
                  + b_ref[...]).astype(o_ref.dtype)


# ----------------------------------------------------------------------------
# Kernel 1b: dense linear, K-tiled with fp32 VMEM accumulator
# ----------------------------------------------------------------------------
def _linear_kernel_acc(x_ref, wt_ref, b_ref, o_ref, acc_ref):
    k = pl.program_id(2)

    @pl.when(k == 0)
    def _():
        acc_ref[...] = jnp.zeros_like(acc_ref)

    acc_ref[...] += jnp.dot(x_ref[...], wt_ref[...],
                            preferred_element_type=jnp.float32)

    @pl.when(k == pl.num_programs(2) - 1)
    def _():
        o_ref[...] = (acc_ref[...] + b_ref[...]).astype(o_ref.dtype)


def _pallas_linear_2d(x2d, wt, b2, *, compute_dtype, out_dtype):
    """y = x2d @ wt + b2.  wt: (K_pad, N_pad) compute dtype, b2: (1, N_pad) f32."""
    M, K = x2d.shape
    K_pad, Np = wt.shape
    assert K_pad >= K and b2.shape == (1, Np)

    tn = _pick_col_tile(Np)
    min_row_programs = 2 if Np // tn < 2 else 1       # keep 2 parallel programs
    granule = _row_granule(compute_dtype)
    tm, M_pad = _pick_row_tiling(M, granule=granule, max_tile=_MAX_ROW_TILE,
                                 min_programs=min_row_programs)
    tk = _pick_k_tile(K_pad)
    assert K_pad % tk == 0
    k_steps = K_pad // tk

    # Single fused pad + downcast pass over x (row pad + K pad + bf16 cast).
    if (M_pad, K_pad) != (M, K) or x2d.dtype != compute_dtype:
        x2d = jnp.pad(x2d, ((0, M_pad - M), (0, K_pad - K))).astype(compute_dtype)

    if k_steps == 1:
        out = pl.pallas_call(
            _linear_kernel_single_k,
            out_shape=jax.ShapeDtypeStruct((M_pad, Np), out_dtype),
            grid_spec=pltpu.PrefetchScalarGridSpec(
                num_scalar_prefetch=0,
                grid=(M_pad // tm, Np // tn),
                in_specs=[
                    pl.BlockSpec((tm, K_pad), lambda i, j: (i, 0)),   # x rows
                    pl.BlockSpec((K_pad, tn), lambda i, j: (0, j)),   # weight
                    pl.BlockSpec((1, tn), lambda i, j: (0, j)),       # bias
                ],
                out_specs=pl.BlockSpec((tm, tn), lambda i, j: (i, j)),
            ),
            compiler_params=pltpu.CompilerParams(
                dimension_semantics=("parallel", "parallel"),
                vmem_limit_bytes=_VMEM_LIMIT),
        )(x2d, wt, b2)
    else:
        out = pl.pallas_call(
            _linear_kernel_acc,
            out_shape=jax.ShapeDtypeStruct((M_pad, Np), out_dtype),
            grid_spec=pltpu.PrefetchScalarGridSpec(
                num_scalar_prefetch=0,
                grid=(M_pad // tm, Np // tn, k_steps),
                in_specs=[
                    pl.BlockSpec((tm, tk), lambda i, j, k: (i, k)),   # x rows
                    pl.BlockSpec((tk, tn), lambda i, j, k: (k, j)),   # weight
                    pl.BlockSpec((1, tn), lambda i, j, k: (0, j)),    # bias
                ],
                out_specs=pl.BlockSpec((tm, tn), lambda i, j, k: (i, j)),
                scratch_shapes=[pltpu.VMEM((tm, tn), jnp.float32)],
            ),
            compiler_params=pltpu.CompilerParams(
                dimension_semantics=("parallel", "parallel", "arbitrary"),
                vmem_limit_bytes=_VMEM_LIMIT),
        )(x2d, wt, b2)
    return out[:M]


# ----------------------------------------------------------------------------
# Kernel 2: fused compose+project  o = (x @ W1t + b1) @ W2t + b2
# (intermediate activation stays in VMEM / registers, never hits HBM)
# ----------------------------------------------------------------------------
def _fused_kernel(x_ref, w1_ref, b1_ref, w2_ref, b2_ref, o_ref):
    h = jnp.dot(x_ref[...], w1_ref[...],
                preferred_element_type=jnp.float32) + b1_ref[...]
    h = h.astype(w2_ref.dtype)
    o_ref[...] = (jnp.dot(h, w2_ref[...], preferred_element_type=jnp.float32)
                  + b2_ref[...]).astype(o_ref.dtype)


def _fused_tile_rows(m, k1, midp, np_, *, compute_dtype, out_dtype, budget):
    """Pick (tm, m_pad) for the fused kernel, or None if it cannot fit VMEM.

    Counts double-buffered x/out tiles, double-buffered weights/biases, the
    fp32 intermediate h, its compute-dtype copy, the second matmul's fp32
    result, and ~1 MiB of compiler-internal scratch.
    """
    c = jnp.dtype(compute_dtype).itemsize
    o = jnp.dtype(out_dtype).itemsize
    per_row = (2 * k1 * c            # x tile, 2 pipeline buffers
               + 2 * np_ * o         # out tile, 2 pipeline buffers
               + midp * (4 + c)      # h (fp32) + h cast to compute dtype
               + np_ * 4)            # second matmul fp32 result
    fixed = (2 * (k1 * midp + midp * np_) * c   # both weights, 2 buffers
             + 2 * (midp + np_) * 4             # fp32 biases, 2 buffers
             + (1 << 20))                       # compiler-internal scratch
    if fixed >= budget:
        return None
    max_rows = (budget - fixed) // per_row
    granule = _row_granule(compute_dtype)
    max_tile = min(_MAX_ROW_TILE, (int(max_rows) // granule) * granule)
    if max_tile < granule:
        return None
    return _pick_row_tiling(m, granule=granule, max_tile=max_tile,
                            min_programs=2)


def _pallas_fused_linear_2d(x2d, w1t, b1, w2t, b2, *, tm, m_pad,
                            compute_dtype, out_dtype):
    M, K1 = x2d.shape
    K1w, MIDp = w1t.shape
    MIDp2, Np = w2t.shape
    assert K1w >= K1 and MIDp2 == MIDp
    assert b1.shape == (1, MIDp) and b2.shape == (1, Np)

    # Single fused pad + downcast pass over x.
    if (m_pad, K1w) != (M, K1) or x2d.dtype != compute_dtype:
        x2d = jnp.pad(x2d, ((0, m_pad - M), (0, K1w - K1))).astype(compute_dtype)

    out = pl.pallas_call(
        _fused_kernel,
        out_shape=jax.ShapeDtypeStruct((m_pad, Np), out_dtype),
        grid_spec=pltpu.PrefetchScalarGridSpec(
            num_scalar_prefetch=0,
            grid=(m_pad // tm,),
            in_specs=[
                pl.BlockSpec((tm, K1w), lambda i: (i, 0)),     # x row tile
                pl.BlockSpec((K1w, MIDp), lambda i: (0, 0)),   # fixed inner W
                pl.BlockSpec((1, MIDp), lambda i: (0, 0)),     # fixed inner b
                pl.BlockSpec((MIDp, Np), lambda i: (0, 0)),    # trainable W
                pl.BlockSpec((1, Np), lambda i: (0, 0)),       # trainable b
            ],
            out_specs=pl.BlockSpec((tm, Np), lambda i: (i, 0)),
        ),
        compiler_params=pltpu.CompilerParams(
            dimension_semantics=("parallel",),
            vmem_limit_bytes=_VMEM_LIMIT),
    )(x2d, w1t, b1, w2t, b2)
    return out[:M]


# ----------------------------------------------------------------------------
# Projection module (JAX / Pallas version)
# ----------------------------------------------------------------------------
class Projection:
    """Linear projection, optionally composed with a fixed inner projection.

    Mirrors ldp.models.projections.Projection.forward: the optional `compose`
    projection (fixed, never trained) is applied first, then the trainable
    `project` linear layer.  Weights are kept pre-transposed, lane/K-padded
    and in bf16; matmuls accumulate in fp32; output dtype is configurable
    (fp32 default to match PyTorch).
    """

    def __init__(self, in_features, out_features, compose=None, *,
                 key=None, compute_dtype=jnp.bfloat16, out_dtype=jnp.float32):
        self.in_features = in_features
        self.out_features = out_features
        self.compose = compose
        self.compute_dtype = compute_dtype
        self.out_dtype = out_dtype

        eff_in = in_features
        if compose is not None:
            if in_features != compose.in_features:
                raise ValueError(
                    f"composed projection expects {compose.in_features} "
                    f"features, but new one expects {in_features}")
            eff_in = compose.out_features
        self._eff_in = eff_in

        # nn.Linear-style init: weight (out, eff_in), bias (out,), U(+-1/sqrt(in)).
        if key is None:
            key = jax.random.PRNGKey(0)
        kw, kb = jax.random.split(key)
        bound = 1.0 / float(eff_in) ** 0.5
        self.weight = jax.random.uniform(kw, (out_features, eff_in),
                                         jnp.float32, -bound, bound)
        self.bias = jax.random.uniform(kb, (out_features,),
                                       jnp.float32, -bound, bound)

        # Pre-transposed compute copies, built once at init:
        #  * output (lane) dim padded to a multiple of 128 -> dense stores;
        #  * large ragged reduction dim padded to a multiple of 256 -> K grid
        #    always uses MXU-aligned 256/512 tiles (zero pad rows are inert).
        # TODO(synk): if self.weight / self.bias are ever updated (training),
        # these compute copies must be rebuilt; no custom_vjp is provided so
        # gradients do not flow through the pallas_call.
        n_pad = _round_up(out_features, _LANE)
        k_pad = eff_in if eff_in <= 1024 else _round_up(eff_in, 256)
        self._n_pad = n_pad
        self._k_pad = k_pad
        self._wt = jnp.pad(self.weight.T,
                           ((0, k_pad - eff_in), (0, n_pad - out_features))
                           ).astype(compute_dtype)
        self._b = jnp.pad(self.bias.reshape(1, -1),
                          ((0, 0), (0, n_pad - out_features))
                          ).astype(jnp.float32)

        if compose is not None:
            # Row-pad the trainable weight up to the compose layer's padded
            # output width so the fused kernel consumes its lane-padded
            # intermediate directly (zero pad rows have no effect).
            self._wt_fused = jnp.pad(
                self.weight.T,
                ((0, compose._n_pad - eff_in), (0, n_pad - out_features))
            ).astype(compute_dtype)
        else:
            self._wt_fused = None

    def __call__(self, inputs):
        features = inputs.shape[-1]
        if features != self.in_features:
            raise ValueError(
                f"expected {self.in_features} input features, got {features}")
        lead = inputs.shape[:-1]
        x2d = inputs.reshape(-1, features)
        m = x2d.shape[0]

        plan = None
        if self.compose is not None:
            plan = _fused_tile_rows(
                m, self.compose._k_pad, self.compose._n_pad, self._n_pad,
                compute_dtype=self.compute_dtype, out_dtype=self.out_dtype,
                budget=_FUSED_VMEM_BUDGET)

        if plan is not None:
            # Fused path: fixed inner projection + trainable outer projection
            # in one kernel; intermediate activation never touches HBM.
            tm, m_pad = plan
            y2d = _pallas_fused_linear_2d(
                x2d, self.compose._wt, self.compose._b,
                self._wt_fused, self._b, tm=tm, m_pad=m_pad,
                compute_dtype=self.compute_dtype, out_dtype=self.out_dtype)
        else:
            if self.compose is not None:
                # Fallback for weights too large to co-reside in VMEM.
                x2d = jax.lax.stop_gradient(self.compose(inputs)).reshape(
                    -1, self.compose.out_features)
            y2d = _pallas_linear_2d(x2d, self._wt, self._b,
                                    compute_dtype=self.compute_dtype,
                                    out_dtype=self.out_dtype)

        y2d = y2d[:, :self.out_features]
        return y2d.reshape(*lead, self.out_features)

    # TODO(synk): nullspace() needs an SVD-based nullspace of the weight
    # (torch.linalg); it is not part of the forward pass and has no clean
    # Pallas equivalent, so it is omitted here.


# ----------------------------------------------------------------------------
# Demo / self-test
# ----------------------------------------------------------------------------
if __name__ == "__main__":
    key = jax.random.PRNGKey(0)
    k_in, k_inner, k_outer, k_big_in, k_big = jax.random.split(key, 5)

    in_features, mid_features, out_features = 32, 24, 16
    batch, seq = 2, 8

    # Inner fixed projection 32 -> 24, outer trainable 24 -> 16, composed so
    # the full Projection maps (*, 32) -> (*, 16).
    inner = Projection(in_features, mid_features, key=k_inner)
    model = Projection(in_features, out_features, compose=inner, key=k_outer)

    x = jax.random.normal(k_in, (batch, seq, in_features), jnp.float32)

    # Exercise the fused compose+project kernel and the single-K linear kernel.
    y = jax.block_until_ready(model(x))
    y_inner = jax.block_until_ready(inner(x))
    assert y.shape == (batch, seq, out_features), y.shape
    assert y_inner.shape == (batch, seq, mid_features), y_inner.shape

    # Reference mirroring the kernel arithmetic: bf16 operands, fp32
    # accumulation, fp32 bias add, bf16 re-round of the fused intermediate.
    def bf(v):
        return v.astype(jnp.bfloat16).astype(jnp.float32)

    h_ref = bf(x) @ bf(inner.weight).T + inner.bias
    y_inner_ref = h_ref
    y_ref = bf(h_ref) @ bf(model.weight).T + model.bias

    err_inner = float(jnp.max(jnp.abs(y_inner - y_inner_ref)))
    err = float(jnp.max(jnp.abs(y - y_ref)))
    assert err_inner < 1e-3, err_inner
    assert err < 1e-3, err

    # Loose sanity check against the pure-fp32 PyTorch math (bf16 weights).
    y_fp32 = (x @ inner.weight.T + inner.bias) @ model.weight.T + model.bias
    assert float(jnp.max(jnp.abs(y - y_fp32))) < 1e-1

    # Exercise the K-tiled accumulator path (ragged reduction dim > 1024:
    # padded to a 256-multiple at init and split into 256-wide K tiles).
    big = Projection(1100, 256, key=k_big)
    xb = jax.random.normal(k_big_in, (4, 1100), jnp.float32)
    yb = jax.block_until_ready(big(xb))
    assert yb.shape == (4, 256), yb.shape
    yb_ref = bf(xb) @ bf(big.weight).T + big.bias
    err_big = float(jnp.max(jnp.abs(yb - yb_ref)))
    assert err_big < 1e-2, err_big

    print("KERNEL_OK")
</pallas_src>

<mosaic_0001>
module attributes {stable_mosaic.version = 11 : i64} {
  func.func @_fused_kernel(%arg0: i32, %arg1: memref<16x32xbf16, #tpu.memory_space<vmem>>, %arg2: memref<32x128xbf16, #tpu.memory_space<vmem>>, %arg3: memref<1x128xf32, #tpu.memory_space<vmem>>, %arg4: memref<128x128xbf16, #tpu.memory_space<vmem>>, %arg5: memref<1x128xf32, #tpu.memory_space<vmem>>, %arg6: memref<16x128xf32, #tpu.memory_space<vmem>>) attributes {dimension_semantics = [#tpu.dimension_semantics<parallel>], iteration_bounds = array<i64: 1>, scalar_prefetch = 0 : i64, scratch_operands = 0 : i64, tpu.core_type = #tpu.core_type<tc>, window_params = [{transform_indices = @transform_0, window_bounds = array<i64: 16, 32>}, {pipeline_mode = #tpu.pipeline_mode<synchronous>, transform_indices = @transform_1, window_bounds = array<i64: 32, 128>}, {pipeline_mode = #tpu.pipeline_mode<synchronous>, transform_indices = @transform_2, window_bounds = array<i64: 1, 128>}, {pipeline_mode = #tpu.pipeline_mode<synchronous>, transform_indices = @transform_3, window_bounds = array<i64: 128, 128>}, {pipeline_mode = #tpu.pipeline_mode<synchronous>, transform_indices = @transform_4, window_bounds = array<i64: 1, 128>}, {transform_indices = @transform_5, window_bounds = array<i64: 16, 128>}]} {
    %c0 = arith.constant 0 : index
    %c0_0 = arith.constant 0 : index
    %0 = vector.load %arg1[%c0, %c0_0] : memref<16x32xbf16, #tpu.memory_space<vmem>>, vector<16x32xbf16>
    %c0_1 = arith.constant 0 : index
    %c0_2 = arith.constant 0 : index
    %1 = vector.load %arg2[%c0_1, %c0_2] : memref<32x128xbf16, #tpu.memory_space<vmem>>, vector<32x128xbf16>
    %cst = arith.constant dense<0.000000e+00> : vector<16x128xf32>
    %2 = tpu.matmul %0, %1, %cst {dimension_numbers = #tpu.dot_dimension_numbers<[1], [0], [0], [1], [0, 0, 1, 1], [], []>} : vector<16x32xbf16>, vector<32x128xbf16>, vector<16x128xf32> -> vector<16x128xf32>
    %c0_3 = arith.constant 0 : index
    %c0_4 = arith.constant 0 : index
    %3 = vector.load %arg3[%c0_3, %c0_4] : memref<1x128xf32, #tpu.memory_space<vmem>>, vector<1x128xf32>
    %4 = vector.broadcast %3 : vector<1x128xf32> to vector<16x128xf32>
    %5 = arith.addf %2, %4 : vector<16x128xf32>
    %6 = arith.truncf %5 : vector<16x128xf32> to vector<16x128xbf16>
    %c0_5 = arith.constant 0 : index
    %c0_6 = arith.constant 0 : index
    %7 = vector.load %arg4[%c0_5, %c0_6] : memref<128x128xbf16, #tpu.memory_space<vmem>>, vector<128x128xbf16>
    %cst_7 = arith.constant dense<0.000000e+00> : vector<16x128xf32>
    %8 = tpu.matmul %6, %7, %cst_7 {dimension_numbers = #tpu.dot_dimension_numbers<[1], [0], [0], [1], [0, 0, 1, 1], [], []>} : vector<16x128xbf16>, vector<128x128xbf16>, vector<16x128xf32> -> vector<16x128xf32>
    %c0_8 = arith.constant 0 : index
    %c0_9 = arith.constant 0 : index
    %9 = vector.load %arg5[%c0_8, %c0_9] : memref<1x128xf32, #tpu.memory_space<vmem>>, vector<1x128xf32>
    %10 = vector.broadcast %9 : vector<1x128xf32> to vector<16x128xf32>
    %11 = arith.addf %8, %10 : vector<16x128xf32>
    %c0_10 = arith.constant 0 : index
    %c0_11 = arith.constant 0 : index
    %12 = vector.load %arg6[%c0_10, %c0_11] : memref<16x128xf32, #tpu.memory_space<vmem>>, vector<16x128xf32>
    tpu.vector_store %arg6[%c0_10, %c0_11], %11 {strides = array<i32>} : memref<16x128xf32, #tpu.memory_space<vmem>>, vector<16x128xf32>,
    return
  }
  func.func @transform_0(%arg0: i32) -> (i32, i32) {
    %c0_i32 = arith.constant 0 : i32
    %c0_i32_0 = arith.constant 0 : i32
    return %arg0, %c0_i32 : i32, i32
  }
  func.func @transform_1(%arg0: i32) -> (i32, i32) {
    %c0_i32 = arith.constant 0 : i32
    %c0_i32_0 = arith.constant 0 : i32
    %c0_i32_1 = arith.constant 0 : i32
    return %c0_i32, %c0_i32_0 : i32, i32
  }
  func.func @transform_2(%arg0: i32) -> (i32, i32) {
    %c0_i32 = arith.constant 0 : i32
    %c0_i32_0 = arith.constant 0 : i32
    %c0_i32_1 = arith.constant 0 : i32
    return %c0_i32, %c0_i32_0 : i32, i32
  }
  func.func @transform_3(%arg0: i32) -> (i32, i32) {
    %c0_i32 = arith.constant 0 : i32
    %c0_i32_0 = arith.constant 0 : i32
    %c0_i32_1 = arith.constant 0 : i32
    return %c0_i32, %c0_i32_0 : i32, i32
  }
  func.func @transform_4(%arg0: i32) -> (i32, i32) {
    %c0_i32 = arith.constant 0 : i32
    %c0_i32_0 = arith.constant 0 : i32
    %c0_i32_1 = arith.constant 0 : i32
    return %c0_i32, %c0_i32_0 : i32, i32
  }
  func.func @transform_5(%arg0: i32) -> (i32, i32) {
    %c0_i32 = arith.constant 0 : i32
    %c0_i32_0 = arith.constant 0 : i32
    return %arg0, %c0_i32 : i32, i32
  }
}

</mosaic_0001>

<bundles_post_ra>
// kernel: tpu_custom_call.1
= control target key start
LH: loop header
LB: loop body
LE: loop exit
PB: predicated region body
PF: predicated region fallthrough
CT: control target
= control target key end

     0   :  { %10 = vsyncpa [#allocation3], 0  ;;  %s490_s0 = inlined_call_operand.hbm [shape: bf16[16,32], index: 0, kind: input, shape index: {}]   ;;  %s491_s1 = inlined_call_operand.hbm [shape: bf16[32,128], index: 1, kind: input, shape index: {}]   ;;  %s492_s2 = inlined_call_operand.vmem [shape: f32[1,128], index: 2, kind: input, shape index: {}]   ;;  %s493_s3 = inlined_call_operand.hbm [shape: bf16[128,128], index: 3, kind: input, shape index: {}]   ;;  %s494_s4 = inlined_call_operand.vmem [shape: f32[1,128], index: 4, kind: input, shape index: {}]   ;;  %s495_s5 = inlined_call_operand.hbm [shape: f32[16,128], index: 5, kind: output, shape index: {}]  }
   0x1   :  { %11 = vsyncpa [#allocation6], 0 }
   0x2   :  { %12 = vsyncpa [#allocation4], 0  ;;  %s432_s18 = smov [#allocation5]   ;;  %s433_s20 = smov [#allocation2]  }
   0x3   :  { %s30_s19 = sshll.u32 %s432_s18, 4  ;;  %s18_s21 = sshll.u32 %s433_s20, 4  ;;  %s31_s19 = int_to_ptr.vmem [resolvable:$true] %s30_s19  ;;  %s19_s21 = int_to_ptr.vmem [resolvable:$true] %s18_s21 }
   0x4   :  { %s354_s22 = scalar_lea.vmem %s31_s19, 256  ;;  %p359_p1 = scmp.lt.s32.totalorder %s31_s19, %s31_s19 }
   0x5   :  { %p355_p0 = scmp.ne.s32.totalorder %s31_s19, %s354_s22  ;;  %p360_p2 = scmp.lt.s32.totalorder %s354_s22, %s354_s22 }
   0x7   :  { %p361_p3 = por %p360_p2, %p359_p1 }
   0x9   :  { %p362_p4 = pnand %p361_p3, %p355_p0 }
   0xb   :  { %365 = shalt.err (!%p362_p4)
}
   0xc   :  { %s434_s23 = smov 64   ;;  %s435_s24 = smov 4  }
   0xd   :  { %36 = dma.hbm_to_vmem [thread:$0]  %s491_s1, 256, %s31_s19, [#allocation6], %s434_s23, %s434_s23, %s435_s24  }
   0xe   :  { %s374_s27 = scalar_lea.vmem %s19_s21, 128  ;;  %p379_p6 = scmp.lt.s32.totalorder %s19_s21, %s19_s21 }
   0xf   :  { %p375_p5 = scmp.ne.s32.totalorder %s19_s21, %s374_s27  ;;  %p380_p7 = scmp.lt.s32.totalorder %s374_s27, %s374_s27 }
  0x11   :  { %p381_p8 = por %p380_p7, %p379_p6 }
  0x13   :  { %p382_p9 = pnand %p381_p8, %p375_p5 }
  0x15   :  { %385 = shalt.err (!%p382_p9)
}
  0x16   :  { %24 = dma.hbm_to_vmem [thread:$0]  %s490_s0, 128, %s19_s21, [#allocation3], %s434_s23, %s434_s23, %s435_s24  }
  0x17   :  { %s436_s30 = smov [#allocation7]  }
  0x18   :  { %s44_s6 = sshll.u32 %s436_s30, 4  ;;  %s45_s6 = int_to_ptr.vmem [resolvable:$true] %s44_s6 }
  0x19   :  { %s394_s7 = scalar_lea.vmem %s45_s6, 1024  ;;  %p399_p11 = scmp.lt.s32.totalorder %s45_s6, %s45_s6 }
  0x1a   :  { %p395_p10 = scmp.ne.s32.totalorder %s45_s6, %s394_s7  ;;  %p400_p12 = scmp.lt.s32.totalorder %s394_s7, %s394_s7 }
  0x1c   :  { %p401_p13 = por %p400_p12, %p399_p11 }
  0x1e   :  { %p402_p0 = pnand %p401_p13, %p395_p10 }
  0x20   :  { %405 = shalt.err (!%p402_p0)
}
  0x21   :  { %50 = dma.hbm_to_vmem [thread:$0]  %s493_s3, 1024, %s45_s6, [#allocation6], %s434_s23, %s434_s23, %s435_s24  }
  0x22   :  { %426 = dma.done.wait [#allocation3], 128  }
  0x23   :  { %427 = vsyncadd [#allocation3], 4294967168 }
  0x24   :  { %428 = dma.done.wait [#allocation6], 1280  }
  0x25   :  { %429 = vsyncadd [#allocation6], 4294966016  ;;  %v437_v0 = vmov 0.0   ;;  %vm438_vm0 = vmmov 0   ;;  %v335_v1 = vld [vmem:[#allocation5 + $0x8] sm:$0xff]   ;;  %v336_v2 = vld [vmem:[#allocation5] sm:$0xff]  }
  0x26   :  { %297 = vmatprep.subr.bf16.mxu0 %v437_v0  ;;  %301 = vmatprep.mubr.msk.bf16.mxu0 %vm438_vm0, %v437_v0  ;;  %v338_v3 = vld [vmem:[#allocation7 + $0x38] sm:$0xff]   ;;  %v337_v4 = vld [vmem:[#allocation2] sm:$0xff]   ;;  %v339_v5 = vld [vmem:[#allocation7 + $0x30] sm:$0xff]   ;;  %vm93_vm1 = vcmask 261120   ;;  %s439_s11 = smov [#allocation8]  }
  0x27   :  { %305 = vmatprep.subr.bf16.mxu1 %v437_v0  ;;  %321 = vmatprep.mubr.msk.bf16.mxu1 %vm438_vm0, %v437_v0  ;;  %v340_v6 = vld [vmem:[#allocation7 + $0x28] sm:$0xff]   ;;  %v341_v7 = vld [vmem:[#allocation7 + $0x20] sm:$0xff]   ;;  %v342_v8 = vld [vmem:[#allocation7 + $0x18] sm:$0xff]   ;;  %s258_s12 = sshll.u32 %s439_s11, 4  ;;  %s259_s12 = int_to_ptr.vmem [resolvable:$true] %s258_s12 }
  0x28   :  { %298 = vmatpush3.bf16.msra.mxu0 %v335_v1  ;;  %306 = vmatpush3.bf16.msra.mxu1 %v338_v3  ;;  %v343_v9 = vld [vmem:[#allocation7 + $0x10] sm:$0xff]   ;;  %v344_v10 = vld [vmem:[#allocation7 + $0x8] sm:$0xff]   ;;  %v345_v11 = vld [vmem:[#allocation7] sm:$0xff]   ;;  %p411_p2 = scmp.lt.s32.totalorder %s259_s12, %s259_s12 }
  0x29   :  { %299 = vmatprep.subr.bf16.mxu0 %v437_v0  ;;  %307 = vmatprep.subr.bf16.mxu1 %v437_v0  ;;  %v271_v13 = vld [vmem:[%s492_s2] ss:$0 sm:$0xff]  ;;  %s406_s2 = scalar_lea.vmem %s259_s12, 256 }
  0x2a   :  { %v276_v20 = vld [vmem:[%s494_s4] ss:$0 sm:$0xff]  ;;  %p407_p1 = scmp.ne.s32.totalorder %s259_s12, %s406_s2  ;;  %p412_p3 = scmp.lt.s32.totalorder %s406_s2, %s406_s2 }
  0x2c   :  { %300 = vmatpush3.bf16.msra.mxu0 %v336_v2  ;;  %308 = vmatpush3.bf16.msra.mxu1 %v339_v5  ;;  %p413_p4 = por %p412_p3, %p411_p2 }
  0x2d   :  { %309 = vmatprep.subr.bf16.mxu1 %v437_v0 }
  0x2e   :  { %p414_p5 = pnand %p413_p4, %p407_p1 }
  0x2f   :  { %302 = vmatmul.mubr.msk.bf16.vlgmr.msra.gmra.mxu0 %vm93_vm1, %v337_v4 }
  0x30   :  { %310 = vmatpush3.bf16.msra.mxu1 %v340_v6 }
  0x31   :  { %311 = vmatprep.subr.bf16.mxu1 %v437_v0 }
  0x34   :  { %312 = vmatpush3.bf16.msra.mxu1 %v341_v7 }
  0x35   :  { %313 = vmatprep.subr.bf16.mxu1 %v437_v0 }
  0x38   :  { %314 = vmatpush3.bf16.msra.mxu1 %v342_v8 }
  0x39   :  { %315 = vmatprep.subr.bf16.mxu1 %v437_v0 }
  0x3c   :  { %316 = vmatpush3.bf16.msra.mxu1 %v343_v9 }
  0x3d   :  { %317 = vmatprep.subr.bf16.mxu1 %v437_v0 }
  0x40   :  { %318 = vmatpush3.bf16.msra.mxu1 %v344_v10 }
  0x41   :  { %319 = vmatprep.subr.bf16.mxu1 %v437_v0 }
  0x44   :  { %320 = vmatpush3.bf16.msra.mxu1 %v345_v11 }
  0xef   :  { %v131_v12 = vpop.f32.mrf.mxu0 }
  0xf0   :  { %v132_v16 = vadd.f32 %v271_v13, %v131_v12 }
  0xf1   :  { %v303_v14 = vpop.f32.mrf.mxu0 }
  0xf3   :  { %v134_v15 = vpop.f32.mrf.mxu0 }
  0xf4   :  { %v135_v17 = vadd.f32 %v271_v13, %v134_v15 }
  0xf5   :  { %v304_v18 = vpop.f32.mrf.mxu0 }
  0xf6   :  { %v138_v19 = vpack.c.bf16 %v135_v17, %v132_v16 }
  0xf8   :  { %322 = vmatmul.mubr.bf16.vlgmr.msra.gmra.mxu1 %v138_v19 }
 0x1b8   :  { %v244_v21 = vpop.f32.mrf.mxu1 }
 0x1b9   :  { %v245_v22 = vadd.f32 %v276_v20, %v244_v21 }
 0x1ba   :  { %v323_v23 = vpop.f32.mrf.mxu1 }
 0x1bb   :  { %251 = vst [vmem:[#allocation8] sm:$0xff] %v245_v22 }
 0x1bc   :  { %v247_v24 = vpop.f32.mrf.mxu1 }
 0x1bd   :  { %v248_v25 = vadd.f32 %v276_v20, %v247_v24 }
 0x1be   :  { %v324_v26 = vpop.f32.mrf.mxu1 }
 0x1bf   :  { %252 = vst [vmem:[#allocation8 + $0x8] sm:$0xff] %v248_v25 }
 0x1c0   :  { %417 = shalt.err (!%p414_p5)
}
 0x1c1   :  { %s440_s13 = smov 128   ;;  %s441_s4 = smov 8  }
 0x1c2   :  { %264 = dma.vmem_to_hbm [thread:$0]  %s259_s12, 256, %s495_s5, [#allocation4], %s440_s13, %s440_s13, %s441_s4  }
 0x1c3   :  { %430 = dma.done.wait [#allocation4], 256  }
 0x1c4   :  { %431 = vsyncadd [#allocation4], 4294967040 }
 0x1c5   :  { %268 = vsyncpa [#allocation3], 1 }
 0x1c6   :  { %269 = vsyncpa [#allocation6], 1 }
 0x1c7   :  { %270 = vsyncpa [#allocation4], 1 }

</bundles_post_ra>
